<compile_context>
chip_gen: v7x
topology: tpu7x:2x2x1
jax: 0.10.0
libtpu: 0.0.40
codegen_flags: <defaults>
</compile_context>

<pallas_src>
import functools

import jax
import jax.numpy as jnp
from jax import lax
from jax.experimental import pallas as pl
from jax.experimental.pallas import tpu as pltpu


def net_kernel(x_ref, wx_ref, wh_ref, b_ref, wfc_ref, bfc_ref, out_ref,
               *, T, Bp, H, D):
    """Whole forward pass in one kernel (everything fits easily in VMEM at these sizes).

    x_ref   : (T*Bp, D)     time-major, flattened & batch-padded in the wrapper
    wx_ref  : (D, 4H)       gate-concatenated fused input weights ((W_ih @ emb).T), order [i,f,o,g]
    wh_ref  : (H, 4H)       gate-concatenated recurrent weights (W_hh.T),            order [i,f,o,g]
    b_ref   : (1, 4H)       combined LSTM bias (b_ih + b_hh),                         order [i,f,o,g]
    wfc_ref : (H, D)        final linear weight, pre-transposed
    bfc_ref : (1, D)        final linear bias
    out_ref : (Bp, D + 2H)  packed [ y | h_n | c_n ]
    """
    mm_dtype = wx_ref.dtype  # f32 or bf16 (MXU-feed dtype); accumulation is always f32

    # ---- hoisted input-side gate pre-activations: ONE (T*Bp, D) @ (D, 4H) GEMM ----
    gx = jnp.dot(x_ref[...], wx_ref[...],
                 preferred_element_type=jnp.float32) + b_ref[...]        # (T*Bp, 4H) f32

    wh = wh_ref[...]                                                     # (H, 4H)

    # Packed-nonlinearity lane mask (hoisted): sigmoid on lanes [0, 3H), tanh on [3H, 4H).
    lane = lax.broadcasted_iota(jnp.int32, (Bp, 4 * H), 1)
    sig_mask = lane < 3 * H

    h = jnp.zeros((Bp, H), jnp.float32)
    c = jnp.zeros((Bp, H), jnp.float32)

    # ---- serial recurrence: one lane-exact (Bp,H)@(H,4H) matmul per step ----
    # T is small & static: a static Python unroll gives static gx slices and lets the
    # scheduler overlap VPU/EUP gate math of step t with the MXU push of step t+1.
    for t in range(T):
        z = gx[t * Bp:(t + 1) * Bp, :] + jnp.dot(
            h.astype(mm_dtype), wh, preferred_element_type=jnp.float32)  # (Bp, 4H)
        act = jnp.where(sig_mask, jax.nn.sigmoid(z), jnp.tanh(z))        # one packed vreg pass
        gi = act[:, 0:H]
        gf = act[:, H:2 * H]
        go = act[:, 2 * H:3 * H]
        gg = act[:, 3 * H:4 * H]
        c = gf * c + gi * gg
        h = go * jnp.tanh(c)

    # Dropout(p=0) on h is the identity.
    y = jnp.dot(h.astype(wfc_ref.dtype), wfc_ref[...],
                preferred_element_type=jnp.float32) + bfc_ref[...]       # (Bp, D)

    # Single packed output slab: [ y | h_n | c_n ] along the lane axis.
    out_ref[...] = jnp.concatenate([y, h, c], axis=1)


def _reorder_gates(w):
    """PyTorch gate order [i, f, g, o] (along leading 4H axis) -> packed [i, f, o, g]."""
    gi, gf, gg, go = jnp.split(w, 4, axis=0)
    return jnp.concatenate([gi, gf, go, gg], axis=0)


def prepare_net_params(embedding, w_ih, w_hh, b_ih, b_hh, w_fc, b_fc,
                       *, use_bf16_matmul=False):
    """One-time parameter preparation (fuse embedding, reorder gates, transpose).

    Hoisted out of the per-call path: weights are static, so this runs once when the
    parameters are loaded.
    """
    f32 = jnp.float32
    E, D = embedding.shape
    H = w_hh.shape[1]
    assert w_ih.shape == (4 * H, E)

    # Fuse the fixed embedding into the LSTM input projection:
    #   e_t = x_t @ emb.T ; gates_x = e_t @ W_ih.T == x_t @ (W_ih @ emb).T
    w_comb = jnp.dot(w_ih.astype(f32), embedding.astype(f32))            # (4H, D)

    wx = _reorder_gates(w_comb).T                                        # (D, 4H)
    wh = _reorder_gates(w_hh.astype(f32)).T                              # (H, 4H)
    b = _reorder_gates((b_ih.astype(f32) + b_hh.astype(f32))).reshape(1, 4 * H)
    wfc = w_fc.astype(f32).T                                             # (H, D)
    bfc = b_fc.astype(f32).reshape(1, -1)                                # (1, D)

    if use_bf16_matmul:
        # bf16 MXU feed (faster on v6e/v7x); gate math / cell state stay f32.
        wx = wx.astype(jnp.bfloat16)
        wh = wh.astype(jnp.bfloat16)
        wfc = wfc.astype(jnp.bfloat16)

    return wx, wh, b, wfc, bfc, H, D


def net_forward(x, params):
    """Forward pass. x: (B, T, input_size), batch_first. Returns (y, (h_n, c_n))."""
    wx, wh, b, wfc, bfc, H, D = params
    B, T, Dx = x.shape
    assert Dx == D
    f32 = jnp.float32
    mm_dtype = wx.dtype

    # Pad batch to a multiple of 8 sublanes; flatten time-major in the wrapper so the
    # kernel needs no reshape of a VMEM value.
    Bp = max(8, ((B + 7) // 8) * 8)
    xt = jnp.transpose(x.astype(f32), (1, 0, 2))                         # (T, B, D)
    if Bp != B:
        xt = jnp.pad(xt, ((0, 0), (0, Bp - B), (0, 0)))                  # (T, Bp, D)
    x2d = xt.reshape(T * Bp, D).astype(mm_dtype)                         # (T*Bp, D)

    vmem = pl.BlockSpec(memory_space=pltpu.MemorySpace.VMEM)
    out = pl.pallas_call(
        functools.partial(net_kernel, T=T, Bp=Bp, H=H, D=D),
        out_shape=jax.ShapeDtypeStruct((Bp, D + 2 * H), f32),
        in_specs=[vmem] * 6,
        out_specs=vmem,
    )(x2d, wx, wh, b, wfc, bfc)

    # Split the packed slab and strip batch padding.
    y = out[:B, 0:D]
    h_n = out[:B, D:D + H][None, :, :]          # (num_layers=1, B, H)
    c_n = out[:B, D + H:D + 2 * H][None, :, :]
    return y, (h_n, c_n)


def net_reference(x, embedding, w_ih, w_hh, b_ih, b_hh, w_fc, b_fc):
    """Pure-JAX reference mirroring the PyTorch module (f32, PyTorch gate order)."""
    B, T, _ = x.shape
    H = w_hh.shape[1]
    e = jnp.einsum('btd,ed->bte', x, embedding)                          # embed_encode
    h = jnp.zeros((B, H), jnp.float32)
    c = jnp.zeros((B, H), jnp.float32)
    for t in range(T):
        gates = e[:, t] @ w_ih.T + b_ih + h @ w_hh.T + b_hh
        gi, gf, gg, go = jnp.split(gates, 4, axis=1)
        gi = jax.nn.sigmoid(gi)
        gf = jax.nn.sigmoid(gf)
        gg = jnp.tanh(gg)
        go = jax.nn.sigmoid(go)
        c = gf * c + gi * gg
        h = go * jnp.tanh(c)
    y = h @ w_fc.T + b_fc
    return y, (h[None], c[None])


if __name__ == "__main__":
    # Small shapes consistent with the module.
    B, T = 2, 8
    input_size = 16      # feature dim of x, also embedding.shape[1] and fc output size
    embed_out = 32       # embedding.shape[0] -> LSTM input size
    hidden = 32          # LSTM hidden size (4H = 128, lane-exact)

    key = jax.random.PRNGKey(0)
    ks = jax.random.split(key, 8)

    x = jax.random.normal(ks[0], (B, T, input_size), jnp.float32)
    embedding = jax.random.normal(ks[1], (embed_out, input_size), jnp.float32) * 0.1

    # LSTM params (PyTorch layout: (4H, E), (4H, H), gate order i,f,g,o)
    w_ih = jax.random.normal(ks[2], (4 * hidden, embed_out), jnp.float32) * 0.1
    w_hh = jax.random.normal(ks[3], (4 * hidden, hidden), jnp.float32) * 0.1
    b_ih = jax.random.normal(ks[4], (4 * hidden,), jnp.float32) * 0.1
    b_hh = jax.random.normal(ks[5], (4 * hidden,), jnp.float32) * 0.1

    # fc: Linear(hidden, input_size)
    w_fc = jax.random.normal(ks[6], (input_size, hidden), jnp.float32) * 0.1
    b_fc = jax.random.normal(ks[7], (input_size,), jnp.float32) * 0.1

    # One-time parameter prep (f32 MXU feed for exact parity; flip use_bf16_matmul for speed).
    params = prepare_net_params(embedding, w_ih, w_hh, b_ih, b_hh, w_fc, b_fc,
                                use_bf16_matmul=False)

    y, (h_n, c_n) = net_forward(x, params)
    jax.block_until_ready((y, h_n, c_n))

    assert y.shape == (B, input_size)
    assert h_n.shape == (1, B, hidden) and c_n.shape == (1, B, hidden)

    # Correctness vs. a pure-JAX reference (embedding fusion changes accumulation order
    # at the ~1e-6 level, hence the tolerance).
    y_ref, (h_ref, c_ref) = net_reference(x, embedding, w_ih, w_hh, b_ih, b_hh, w_fc, b_fc)
    assert jnp.allclose(y, y_ref, atol=1e-4, rtol=1e-4)
    assert jnp.allclose(h_n, h_ref, atol=1e-4, rtol=1e-4)
    assert jnp.allclose(c_n, c_ref, atol=1e-4, rtol=1e-4)

    print("KERNEL_OK")
</pallas_src>

<mosaic_0001>
module attributes {stable_mosaic.version = 11 : i64} {
  func.func @net_kernel(%arg0: memref<64x16xf32, #tpu.memory_space<vmem>>, %arg1: memref<16x128xf32, #tpu.memory_space<vmem>>, %arg2: memref<32x128xf32, #tpu.memory_space<vmem>>, %arg3: memref<1x128xf32, #tpu.memory_space<vmem>>, %arg4: memref<32x16xf32, #tpu.memory_space<vmem>>, %arg5: memref<1x16xf32, #tpu.memory_space<vmem>>, %arg6: memref<8x80xf32, #tpu.memory_space<vmem>>) attributes {dimension_semantics = [], scalar_prefetch = 0 : i64, scratch_operands = 0 : i64, tpu.core_type = #tpu.core_type<tc>} {
    %c0 = arith.constant 0 : index
    %c0_0 = arith.constant 0 : index
    %0 = vector.load %arg0[%c0, %c0_0] : memref<64x16xf32, #tpu.memory_space<vmem>>, vector<64x16xf32>
    %c0_1 = arith.constant 0 : index
    %c0_2 = arith.constant 0 : index
    %1 = vector.load %arg1[%c0_1, %c0_2] : memref<16x128xf32, #tpu.memory_space<vmem>>, vector<16x128xf32>
    %cst = arith.constant dense<0.000000e+00> : vector<64x128xf32>
    %2 = tpu.matmul %0, %1, %cst {dimension_numbers = #tpu.dot_dimension_numbers<[1], [0], [0], [1], [0, 0, 1, 1], [], []>} : vector<64x16xf32>, vector<16x128xf32>, vector<64x128xf32> -> vector<64x128xf32>
    %c0_3 = arith.constant 0 : index
    %c0_4 = arith.constant 0 : index
    %3 = vector.load %arg3[%c0_3, %c0_4] : memref<1x128xf32, #tpu.memory_space<vmem>>, vector<1x128xf32>
    %4 = vector.broadcast %3 : vector<1x128xf32> to vector<64x128xf32>
    %5 = arith.addf %2, %4 : vector<64x128xf32>
    %c0_5 = arith.constant 0 : index
    %c0_6 = arith.constant 0 : index
    %6 = vector.load %arg2[%c0_5, %c0_6] : memref<32x128xf32, #tpu.memory_space<vmem>>, vector<32x128xf32>
    %7 = tpu.iota {dimensions = array<i32: 1>} : vector<8x128xi32>
    %c96_i32 = arith.constant 96 : i32
    %8 = vector.broadcast %c96_i32 : i32 to vector<8x128xi32>
    %9 = arith.cmpi slt, %7, %8 : vector<8x128xi32>
    %cst_7 = arith.constant 0.000000e+00 : f32
    %10 = vector.broadcast %cst_7 : f32 to vector<8x32xf32>
    %cst_8 = arith.constant 0.000000e+00 : f32
    %11 = vector.broadcast %cst_8 : f32 to vector<8x32xf32>
    %12 = vector.extract_strided_slice %5 {offsets = [0, 0], sizes = [8, 128], strides = [1, 1]} : vector<64x128xf32> to vector<8x128xf32>
    %cst_9 = arith.constant dense<0.000000e+00> : vector<8x128xf32>
    %13 = tpu.matmul %10, %6, %cst_9 {dimension_numbers = #tpu.dot_dimension_numbers<[1], [0], [0], [1], [0, 0, 1, 1], [], []>} : vector<8x32xf32>, vector<32x128xf32>, vector<8x128xf32> -> vector<8x128xf32>
    %14 = arith.addf %12, %13 : vector<8x128xf32>
    %15 = arith.negf %14 : vector<8x128xf32>
    %16 = math.exp %15 : vector<8x128xf32>
    %cst_10 = arith.constant 1.000000e+00 : f32
    %17 = vector.broadcast %cst_10 : f32 to vector<8x128xf32>
    %18 = arith.addf %17, %16 : vector<8x128xf32>
    %19 = arith.divf %17, %18 : vector<8x128xf32>
    %20 = math.tanh %14 : vector<8x128xf32>
    %21 = arith.select %9, %19, %20 : vector<8x128xi1>, vector<8x128xf32>
    %22 = vector.extract_strided_slice %21 {offsets = [0, 0], sizes = [8, 32], strides = [1, 1]} : vector<8x128xf32> to vector<8x32xf32>
    %23 = vector.extract_strided_slice %21 {offsets = [0, 32], sizes = [8, 32], strides = [1, 1]} : vector<8x128xf32> to vector<8x32xf32>
    %24 = vector.extract_strided_slice %21 {offsets = [0, 64], sizes = [8, 32], strides = [1, 1]} : vector<8x128xf32> to vector<8x32xf32>
    %25 = vector.extract_strided_slice %21 {offsets = [0, 96], sizes = [8, 32], strides = [1, 1]} : vector<8x128xf32> to vector<8x32xf32>
    %26 = arith.mulf %23, %11 : vector<8x32xf32>
    %27 = arith.mulf %22, %25 : vector<8x32xf32>
    %28 = arith.addf %26, %27 : vector<8x32xf32>
    %29 = math.tanh %28 : vector<8x32xf32>
    %30 = arith.mulf %24, %29 : vector<8x32xf32>
    %31 = vector.extract_strided_slice %5 {offsets = [8, 0], sizes = [8, 128], strides = [1, 1]} : vector<64x128xf32> to vector<8x128xf32>
    %cst_11 = arith.constant dense<0.000000e+00> : vector<8x128xf32>
    %32 = tpu.matmul %30, %6, %cst_11 {dimension_numbers = #tpu.dot_dimension_numbers<[1], [0], [0], [1], [0, 0, 1, 1], [], []>} : vector<8x32xf32>, vector<32x128xf32>, vector<8x128xf32> -> vector<8x128xf32>
    %33 = arith.addf %31, %32 : vector<8x128xf32>
    %34 = arith.negf %33 : vector<8x128xf32>
    %35 = math.exp %34 : vector<8x128xf32>
    %cst_12 = arith.constant 1.000000e+00 : f32
    %36 = vector.broadcast %cst_12 : f32 to vector<8x128xf32>
    %37 = arith.addf %36, %35 : vector<8x128xf32>
    %38 = arith.divf %36, %37 : vector<8x128xf32>
    %39 = math.tanh %33 : vector<8x128xf32>
    %40 = arith.select %9, %38, %39 : vector<8x128xi1>, vector<8x128xf32>
    %41 = vector.extract_strided_slice %40 {offsets = [0, 0], sizes = [8, 32], strides = [1, 1]} : vector<8x128xf32> to vector<8x32xf32>
    %42 = vector.extract_strided_slice %40 {offsets = [0, 32], sizes = [8, 32], strides = [1, 1]} : vector<8x128xf32> to vector<8x32xf32>
    %43 = vector.extract_strided_slice %40 {offsets = [0, 64], sizes = [8, 32], strides = [1, 1]} : vector<8x128xf32> to vector<8x32xf32>
    %44 = vector.extract_strided_slice %40 {offsets = [0, 96], sizes = [8, 32], strides = [1, 1]} : vector<8x128xf32> to vector<8x32xf32>
    %45 = arith.mulf %42, %28 : vector<8x32xf32>
    %46 = arith.mulf %41, %44 : vector<8x32xf32>
    %47 = arith.addf %45, %46 : vector<8x32xf32>
    %48 = math.tanh %47 : vector<8x32xf32>
    %49 = arith.mulf %43, %48 : vector<8x32xf32>
    %50 = vector.extract_strided_slice %5 {offsets = [16, 0], sizes = [8, 128], strides = [1, 1]} : vector<64x128xf32> to vector<8x128xf32>
    %cst_13 = arith.constant dense<0.000000e+00> : vector<8x128xf32>
    %51 = tpu.matmul %49, %6, %cst_13 {dimension_numbers = #tpu.dot_dimension_numbers<[1], [0], [0], [1], [0, 0, 1, 1], [], []>} : vector<8x32xf32>, vector<32x128xf32>, vector<8x128xf32> -> vector<8x128xf32>
    %52 = arith.addf %50, %51 : vector<8x128xf32>
    %53 = arith.negf %52 : vector<8x128xf32>
    %54 = math.exp %53 : vector<8x128xf32>
    %cst_14 = arith.constant 1.000000e+00 : f32
    %55 = vector.broadcast %cst_14 : f32 to vector<8x128xf32>
    %56 = arith.addf %55, %54 : vector<8x128xf32>
    %57 = arith.divf %55, %56 : vector<8x128xf32>
    %58 = math.tanh %52 : vector<8x128xf32>
    %59 = arith.select %9, %57, %58 : vector<8x128xi1>, vector<8x128xf32>
    %60 = vector.extract_strided_slice %59 {offsets = [0, 0], sizes = [8, 32], strides = [1, 1]} : vector<8x128xf32> to vector<8x32xf32>
    %61 = vector.extract_strided_slice %59 {offsets = [0, 32], sizes = [8, 32], strides = [1, 1]} : vector<8x128xf32> to vector<8x32xf32>
    %62 = vector.extract_strided_slice %59 {offsets = [0, 64], sizes = [8, 32], strides = [1, 1]} : vector<8x128xf32> to vector<8x32xf32>
    %63 = vector.extract_strided_slice %59 {offsets = [0, 96], sizes = [8, 32], strides = [1, 1]} : vector<8x128xf32> to vector<8x32xf32>
    %64 = arith.mulf %61, %47 : vector<8x32xf32>
    %65 = arith.mulf %60, %63 : vector<8x32xf32>
    %66 = arith.addf %64, %65 : vector<8x32xf32>
    %67 = math.tanh %66 : vector<8x32xf32>
    %68 = arith.mulf %62, %67 : vector<8x32xf32>
    %69 = vector.extract_strided_slice %5 {offsets = [24, 0], sizes = [8, 128], strides = [1, 1]} : vector<64x128xf32> to vector<8x128xf32>
    %cst_15 = arith.constant dense<0.000000e+00> : vector<8x128xf32>
    %70 = tpu.matmul %68, %6, %cst_15 {dimension_numbers = #tpu.dot_dimension_numbers<[1], [0], [0], [1], [0, 0, 1, 1], [], []>} : vector<8x32xf32>, vector<32x128xf32>, vector<8x128xf32> -> vector<8x128xf32>
    %71 = arith.addf %69, %70 : vector<8x128xf32>
    %72 = arith.negf %71 : vector<8x128xf32>
    %73 = math.exp %72 : vector<8x128xf32>
    %cst_16 = arith.constant 1.000000e+00 : f32
    %74 = vector.broadcast %cst_16 : f32 to vector<8x128xf32>
    %75 = arith.addf %74, %73 : vector<8x128xf32>
    %76 = arith.divf %74, %75 : vector<8x128xf32>
    %77 = math.tanh %71 : vector<8x128xf32>
    %78 = arith.select %9, %76, %77 : vector<8x128xi1>, vector<8x128xf32>
    %79 = vector.extract_strided_slice %78 {offsets = [0, 0], sizes = [8, 32], strides = [1, 1]} : vector<8x128xf32> to vector<8x32xf32>
    %80 = vector.extract_strided_slice %78 {offsets = [0, 32], sizes = [8, 32], strides = [1, 1]} : vector<8x128xf32> to vector<8x32xf32>
    %81 = vector.extract_strided_slice %78 {offsets = [0, 64], sizes = [8, 32], strides = [1, 1]} : vector<8x128xf32> to vector<8x32xf32>
    %82 = vector.extract_strided_slice %78 {offsets = [0, 96], sizes = [8, 32], strides = [1, 1]} : vector<8x128xf32> to vector<8x32xf32>
    %83 = arith.mulf %80, %66 : vector<8x32xf32>
    %84 = arith.mulf %79, %82 : vector<8x32xf32>
    %85 = arith.addf %83, %84 : vector<8x32xf32>
    %86 = math.tanh %85 : vector<8x32xf32>
    %87 = arith.mulf %81, %86 : vector<8x32xf32>
    %88 = vector.extract_strided_slice %5 {offsets = [32, 0], sizes = [8, 128], strides = [1, 1]} : vector<64x128xf32> to vector<8x128xf32>
    %cst_17 = arith.constant dense<0.000000e+00> : vector<8x128xf32>
    %89 = tpu.matmul %87, %6, %cst_17 {dimension_numbers = #tpu.dot_dimension_numbers<[1], [0], [0], [1], [0, 0, 1, 1], [], []>} : vector<8x32xf32>, vector<32x128xf32>, vector<8x128xf32> -> vector<8x128xf32>
    %90 = arith.addf %88, %89 : vector<8x128xf32>
    %91 = arith.negf %90 : vector<8x128xf32>
    %92 = math.exp %91 : vector<8x128xf32>
    %cst_18 = arith.constant 1.000000e+00 : f32
    %93 = vector.broadcast %cst_18 : f32 to vector<8x128xf32>
    %94 = arith.addf %93, %92 : vector<8x128xf32>
    %95 = arith.divf %93, %94 : vector<8x128xf32>
    %96 = math.tanh %90 : vector<8x128xf32>
    %97 = arith.select %9, %95, %96 : vector<8x128xi1>, vector<8x128xf32>
    %98 = vector.extract_strided_slice %97 {offsets = [0, 0], sizes = [8, 32], strides = [1, 1]} : vector<8x128xf32> to vector<8x32xf32>
    %99 = vector.extract_strided_slice %97 {offsets = [0, 32], sizes = [8, 32], strides = [1, 1]} : vector<8x128xf32> to vector<8x32xf32>
    %100 = vector.extract_strided_slice %97 {offsets = [0, 64], sizes = [8, 32], strides = [1, 1]} : vector<8x128xf32> to vector<8x32xf32>
    %101 = vector.extract_strided_slice %97 {offsets = [0, 96], sizes = [8, 32], strides = [1, 1]} : vector<8x128xf32> to vector<8x32xf32>
    %102 = arith.mulf %99, %85 : vector<8x32xf32>
    %103 = arith.mulf %98, %101 : vector<8x32xf32>
    %104 = arith.addf %102, %103 : vector<8x32xf32>
    %105 = math.tanh %104 : vector<8x32xf32>
    %106 = arith.mulf %100, %105 : vector<8x32xf32>
    %107 = vector.extract_strided_slice %5 {offsets = [40, 0], sizes = [8, 128], strides = [1, 1]} : vector<64x128xf32> to vector<8x128xf32>
    %cst_19 = arith.constant dense<0.000000e+00> : vector<8x128xf32>
    %108 = tpu.matmul %106, %6, %cst_19 {dimension_numbers = #tpu.dot_dimension_numbers<[1], [0], [0], [1], [0, 0, 1, 1], [], []>} : vector<8x32xf32>, vector<32x128xf32>, vector<8x128xf32> -> vector<8x128xf32>
    %109 = arith.addf %107, %108 : vector<8x128xf32>
    %110 = arith.negf %109 : vector<8x128xf32>
    %111 = math.exp %110 : vector<8x128xf32>
    %cst_20 = arith.constant 1.000000e+00 : f32
    %112 = vector.broadcast %cst_20 : f32 to vector<8x128xf32>
    %113 = arith.addf %112, %111 : vector<8x128xf32>
    %114 = arith.divf %112, %113 : vector<8x128xf32>
    %115 = math.tanh %109 : vector<8x128xf32>
    %116 = arith.select %9, %114, %115 : vector<8x128xi1>, vector<8x128xf32>
    %117 = vector.extract_strided_slice %116 {offsets = [0, 0], sizes = [8, 32], strides = [1, 1]} : vector<8x128xf32> to vector<8x32xf32>
    %118 = vector.extract_strided_slice %116 {offsets = [0, 32], sizes = [8, 32], strides = [1, 1]} : vector<8x128xf32> to vector<8x32xf32>
    %119 = vector.extract_strided_slice %116 {offsets = [0, 64], sizes = [8, 32], strides = [1, 1]} : vector<8x128xf32> to vector<8x32xf32>
    %120 = vector.extract_strided_slice %116 {offsets = [0, 96], sizes = [8, 32], strides = [1, 1]} : vector<8x128xf32> to vector<8x32xf32>
    %121 = arith.mulf %118, %104 : vector<8x32xf32>
    %122 = arith.mulf %117, %120 : vector<8x32xf32>
    %123 = arith.addf %121, %122 : vector<8x32xf32>
    %124 = math.tanh %123 : vector<8x32xf32>
    %125 = arith.mulf %119, %124 : vector<8x32xf32>
    %126 = vector.extract_strided_slice %5 {offsets = [48, 0], sizes = [8, 128], strides = [1, 1]} : vector<64x128xf32> to vector<8x128xf32>
    %cst_21 = arith.constant dense<0.000000e+00> : vector<8x128xf32>
    %127 = tpu.matmul %125, %6, %cst_21 {dimension_numbers = #tpu.dot_dimension_numbers<[1], [0], [0], [1], [0, 0, 1, 1], [], []>} : vector<8x32xf32>, vector<32x128xf32>, vector<8x128xf32> -> vector<8x128xf32>
    %128 = arith.addf %126, %127 : vector<8x128xf32>
    %129 = arith.negf %128 : vector<8x128xf32>
    %130 = math.exp %129 : vector<8x128xf32>
    %cst_22 = arith.constant 1.000000e+00 : f32
    %131 = vector.broadcast %cst_22 : f32 to vector<8x128xf32>
    %132 = arith.addf %131, %130 : vector<8x128xf32>
    %133 = arith.divf %131, %132 : vector<8x128xf32>
    %134 = math.tanh %128 : vector<8x128xf32>
    %135 = arith.select %9, %133, %134 : vector<8x128xi1>, vector<8x128xf32>
    %136 = vector.extract_strided_slice %135 {offsets = [0, 0], sizes = [8, 32], strides = [1, 1]} : vector<8x128xf32> to vector<8x32xf32>
    %137 = vector.extract_strided_slice %135 {offsets = [0, 32], sizes = [8, 32], strides = [1, 1]} : vector<8x128xf32> to vector<8x32xf32>
    %138 = vector.extract_strided_slice %135 {offsets = [0, 64], sizes = [8, 32], strides = [1, 1]} : vector<8x128xf32> to vector<8x32xf32>
    %139 = vector.extract_strided_slice %135 {offsets = [0, 96], sizes = [8, 32], strides = [1, 1]} : vector<8x128xf32> to vector<8x32xf32>
    %140 = arith.mulf %137, %123 : vector<8x32xf32>
    %141 = arith.mulf %136, %139 : vector<8x32xf32>
    %142 = arith.addf %140, %141 : vector<8x32xf32>
    %143 = math.tanh %142 : vector<8x32xf32>
    %144 = arith.mulf %138, %143 : vector<8x32xf32>
    %145 = vector.extract_strided_slice %5 {offsets = [56, 0], sizes = [8, 128], strides = [1, 1]} : vector<64x128xf32> to vector<8x128xf32>
    %cst_23 = arith.constant dense<0.000000e+00> : vector<8x128xf32>
    %146 = tpu.matmul %144, %6, %cst_23 {dimension_numbers = #tpu.dot_dimension_numbers<[1], [0], [0], [1], [0, 0, 1, 1], [], []>} : vector<8x32xf32>, vector<32x128xf32>, vector<8x128xf32> -> vector<8x128xf32>
    %147 = arith.addf %145, %146 : vector<8x128xf32>
    %148 = arith.negf %147 : vector<8x128xf32>
    %149 = math.exp %148 : vector<8x128xf32>
    %cst_24 = arith.constant 1.000000e+00 : f32
    %150 = vector.broadcast %cst_24 : f32 to vector<8x128xf32>
    %151 = arith.addf %150, %149 : vector<8x128xf32>
    %152 = arith.divf %150, %151 : vector<8x128xf32>
    %153 = math.tanh %147 : vector<8x128xf32>
    %154 = arith.select %9, %152, %153 : vector<8x128xi1>, vector<8x128xf32>
    %155 = vector.extract_strided_slice %154 {offsets = [0, 0], sizes = [8, 32], strides = [1, 1]} : vector<8x128xf32> to vector<8x32xf32>
    %156 = vector.extract_strided_slice %154 {offsets = [0, 32], sizes = [8, 32], strides = [1, 1]} : vector<8x128xf32> to vector<8x32xf32>
    %157 = vector.extract_strided_slice %154 {offsets = [0, 64], sizes = [8, 32], strides = [1, 1]} : vector<8x128xf32> to vector<8x32xf32>
    %158 = vector.extract_strided_slice %154 {offsets = [0, 96], sizes = [8, 32], strides = [1, 1]} : vector<8x128xf32> to vector<8x32xf32>
    %159 = arith.mulf %156, %142 : vector<8x32xf32>
    %160 = arith.mulf %155, %158 : vector<8x32xf32>
    %161 = arith.addf %159, %160 : vector<8x32xf32>
    %162 = math.tanh %161 : vector<8x32xf32>
    %163 = arith.mulf %157, %162 : vector<8x32xf32>
    %c0_25 = arith.constant 0 : index
    %c0_26 = arith.constant 0 : index
    %164 = vector.load %arg4[%c0_25, %c0_26] : memref<32x16xf32, #tpu.memory_space<vmem>>, vector<32x16xf32>
    %cst_27 = arith.constant dense<0.000000e+00> : vector<8x16xf32>
    %165 = tpu.matmul %163, %164, %cst_27 {dimension_numbers = #tpu.dot_dimension_numbers<[1], [0], [0], [1], [0, 0, 1, 1], [], []>} : vector<8x32xf32>, vector<32x16xf32>, vector<8x16xf32> -> vector<8x16xf32>
    %c0_28 = arith.constant 0 : index
    %c0_29 = arith.constant 0 : index
    %166 = vector.load %arg5[%c0_28, %c0_29] : memref<1x16xf32, #tpu.memory_space<vmem>>, vector<1x16xf32>
    %167 = vector.broadcast %166 : vector<1x16xf32> to vector<8x16xf32>
    %168 = arith.addf %165, %167 : vector<8x16xf32>
    %169 = tpu.concatenate %168, %163, %161 in 1 : vector<8x16xf32>, vector<8x32xf32>, vector<8x32xf32> -> vector<8x80xf32>
    %c0_30 = arith.constant 0 : index
    %c0_31 = arith.constant 0 : index
    %170 = vector.load %arg6[%c0_30, %c0_31] : memref<8x80xf32, #tpu.memory_space<vmem>>, vector<8x80xf32>
    tpu.vector_store %arg6[%c0_30, %c0_31], %169 {strides = array<i32>} : memref<8x80xf32, #tpu.memory_space<vmem>>, vector<8x80xf32>,
    return
  }
}

</mosaic_0001>

<bundles_post_ra>
// kernel: tpu_custom_call.1
= control target key start
LH: loop header
LB: loop body
LE: loop exit
PB: predicated region body
PF: predicated region fallthrough
CT: control target
= control target key end

     0   :  { %vm41_vm0 = vcmask 130048   ;;  %v1447_v3 = vmov 0.0|0.0   ;;  %vm1448_vm1 = vmmov 0   ;;  %v1449_v10 = vmov 0.0   ;;  %s1709_s0 = inlined_call_operand.vmem [shape: f32[64,16], index: 0, kind: input, shape index: {}]   ;;  %s1710_s1 = inlined_call_operand.vmem [shape: f32[16,128], index: 1, kind: input, shape index: {}]   ;;  %s1711_s2 = inlined_call_operand.vmem [shape: f32[32,128], index: 2, kind: input, shape index: {}]   ;;  %s1712_s3 = inlined_call_operand.vmem [shape: f32[1,128], index: 3, kind: input, shape index: {}]   ;;  %s1713_s4 = inlined_call_operand.vmem [shape: f32[32,16], index: 4, kind: input, shape index: {}]   ;;  %s1714_s5 = inlined_call_operand.vmem [shape: f32[1,16], index: 5, kind: input, shape index: {}]   ;;  %s1715_s6 = inlined_call_operand.hbm [shape: f32[8,80], index: 6, kind: output, shape index: {}]  }
   0x1   :  { %v32_v0 = vld [vmem:[%s1710_s1] sm:$0xff]  ;;  %v33_v1 = vld [vmem:[%s1710_s1 + $0x8] sm:$0xff]  ;;  %1297 = vmatprep.subr.bf16.mxu1 %v1447_v3  ;;  %v173_v8 = vld [vmem:[%s1711_s2 + $0x10] sm:$0xff]  ;;  %1202 = vmatprep.mubr.msk.f32.mxu1 %vm1448_vm1, %v1449_v10 }
   0x2   :  { %v171_v2 = vld [vmem:[%s1711_s2] sm:$0xff]  ;;  %v1293_v4 = vpack.c.bf16 %v33_v1, %v32_v0  ;;  %v172_v5 = vld [vmem:[%s1711_s2 + $0x8] sm:$0xff]  ;;  %v174_v9 = vld [vmem:[%s1711_s2 + $0x18] sm:$0xff] }
   0x3   :  { %v24_v6 = vld [vmem:[%s1709_s0] sm:$0xff]  ;;  %v1506_v7 = vpack.c.bf16 %v172_v5, %v171_v2 }
   0x4   :  { %1182 = vmatprep.mubr.msk.f32.mxu0 %vm41_vm0, %v24_v6 }
   0x5   :  { %11 = vsyncpa [#allocation3], 0  ;;  %1294 = vmatprep.subr.bf16.mxu0 %v1293_v4  ;;  %1299 = vmatpush3.bf16.msra.mxu1 %v1506_v7  ;;  %v25_v11 = vld [vmem:[%s1709_s0 + $0x8] sm:$0xff]  ;;  %v1521_v12 = vpack.c.bf16 %v174_v9, %v173_v8  ;;  %v1542_v13 = vld [vmem:[%s1712_s3] ss:$0 sm:$0xff]  ;;  %v175_v23 = vlaneseq  ;;  %s1450_s3 = smov 32  }
   0x6   :  { %1296 = vmatpush3.bf16.msra.mxu0 %v1293_v4  ;;  %1300 = vmatprep.subr.bf16.mxu1 %v1447_v3  ;;  %s1451_s13 = smov 64   ;;  %vm178_vm3 = vcmask 261120   ;;  %v26_v52 = vld [vmem:[%s1709_s0 + $0x10] sm:$0xff]  ;;  %v27_v53 = vld [vmem:[%s1709_s0 + $0x18] sm:$0xff]  ;;  %v28_v54 = vld [vmem:[%s1709_s0 + $0x20] sm:$0xff]  ;;  %s1452_s8 = smov 80  }
   0x7   :  { %1309 = vmatprep.subr.bf16.mxu0 %v1447_v3  ;;  %v1545_v24 = vand.u32 127, %v175_v23  ;;  %v29_v55 = vld [vmem:[%s1709_s0 + $0x28] sm:$0xff]  ;;  %v30_v56 = vld [vmem:[%s1709_s0 + $0x30] sm:$0xff]  ;;  %v31_v57 = vld [vmem:[%s1709_s0 + $0x38] sm:$0xff]  ;;  %s1453_s9 = smov 16   ;;  %s1454_s11 = smov [#allocation2]  }
   0x8   :  { %s1089_s2 = sshll.u32 %s1454_s11, 4  ;;  %vm1079_vm4 = vcmask 392192   ;;  %vm1081_vm5 = vcmask 654336   ;;  %s1090_s2 = int_to_ptr.vmem [resolvable:$true] %s1089_s2 }
   0x9   :  { %1183 = vmatmul.mubr.msk.f32.vlgmr.msra.gmra.mrb[0].mxu0 %vm41_vm0, %v25_v11  ;;  %1302 = vmatpush3.bf16.msra.mxu1 %v1521_v12  ;;  %vm177_vm2 = vcmp.lt.s32.totalorder %v1545_v24, 96  ;;  %v987_v24 = vld [vmem:[%s1713_s4 + $0x10] sm:$0xff]  ;;  %s1423_s12 = scalar_lea.vmem %s1090_s2, 128  ;;  %p1428_p1 = scmp.lt.s32.totalorder %s1090_s2, %s1090_s2 }
   0xa   :  { %1311 = vmatpush3.bf16.msra.mxu0 %v1506_v7  ;;  %1303 = vmatprep.subr.bf16.mxu1 %v1447_v3  ;;  %p1424_p0 = scmp.ne.s32.totalorder %s1090_s2, %s1423_s12  ;;  %p1429_p2 = scmp.lt.s32.totalorder %s1423_s12, %s1423_s12 }
   0xb   :  { %1312 = vmatprep.subr.bf16.mxu0 %v1447_v3  ;;  %1185 = vmatprep.mubr.msk.f32.mxu0 %vm41_vm0, %v26_v52 }
   0xc   :  { %1203 = vmatmul.mubr.f32.vlgmr.msra.gmra.mrb[0].mxu1 %v1449_v10  ;;  %p1430_p3 = por %p1429_p2, %p1428_p1 }
   0xd   :  { %1305 = vmatpush3.bf16.msra.mxu1 %v1506_v7  ;;  %1213 = vmatprep.mubr.msk.f32.mxu1 %vm1448_vm1, %v1449_v10 }
   0xe   :  { %1306 = vmatprep.subr.bf16.mxu1 %v1447_v3  ;;  %1314 = vmatpush3.bf16.msra.mxu0 %v1521_v12  ;;  %p1431_p4 = pnand %p1430_p3, %p1424_p0 }
   0xf   :  { %1321 = vmatprep.subr.bf16.mxu0 %v1447_v3  ;;  %1186 = vmatmul.mubr.msk.f32.gmra.mrb[2].mxu0 %vm41_vm0, %v27_v53 }
  0x10   :  { %1188 = vmatprep.mubr.msk.f32.mxu0 %vm41_vm0, %v28_v54 }
  0x11   :  { %1308 = vmatpush3.bf16.msra.mxu1 %v1521_v12 }
  0x12   :  { %1315 = vmatprep.subr.bf16.mxu1 %v1447_v3 }
  0x13   :  { %1189 = vmatmul.mubr.msk.f32.gmra.mrb[4].mxu0 %vm41_vm0, %v29_v55 }
  0x14   :  { %1191 = vmatprep.mubr.msk.f32.mxu0 %vm41_vm0, %v30_v56 }
  0x17   :  { %1192 = vmatmul.mubr.msk.f32.gmra.mrb[6].mxu0 %vm41_vm0, %v31_v57 }
  0x18   :  { %1224 = vmatprep.mubr.msk.f32.mxu0 %vm1448_vm1, %v1449_v10 }
  0xdc   :  { %v1184_v14 = vpop.f32.mrb[0].mxu0 }
  0xdd   :  { %v132_v15 = vpop.f32.mrb[1].mxu0  ;;  %v138_v37 = vadd.f32 %v1184_v14, %v1542_v13 }
  0xde   :  { %v133_v16 = vadd.f32 %v1542_v13, %v132_v15 }
  0xdf   :  { %v248_v17 = vpop.f32.mrb[0].mxu1 }
  0xe0   :  { %v252_v18 = vadd.f32 %v248_v17, %v133_v16  ;;  %v1204_v19 = vpop.f32.mrb[1].mxu1 }
  0xe2   :  { %v1106_v20 = vmul.f32 -1.442695, %v252_v18  ;;  %v1187_v61 = vpop.f32.mrb[2].mxu0 }
  0xe3   :  { %v142_v62 = vpop.f32.mrb[3].mxu0 }
  0xe4   :  { %1359 = vpow2.f32 %v1106_v20  ;;  %v143_v5 = vadd.f32 %v1542_v13, %v142_v62 }
  0xe5   :  { %1361 = vtanh.f32 %v252_v18 }
  0xe6   :  { %v1594_v63 = vpop.f32.mrb[4].mxu0 }
  0xe7   :  { %v1596_v0 = vpop.f32.mrb[5].mxu0 }
  0xea   :  { %v1598_v1 = vpop.f32.mrb[6].mxu0 }
  0xeb   :  { %v1600_v2 = vpop.f32.mrb[7].mxu0 }
  0xee   :  { %v1360_v21 = vpop.eup %1359 }
  0xef   :  { %v256_v22 = vadd.f32 1.0, %v1360_v21  ;;  %v1362_v25 = vpop.eup %1361 }
  0xf1   :  { %1363 = vrcp.f32 %v256_v22 }
  0xfb   :  { %v1364_v26 = vpop.eup %1363 }
  0xfc   :  { %v260_v27 = vsel %vm177_vm2, %v1364_v26, %v1362_v25 }
  0xfd   :  { %263 = vrot.lane.b32.xlu0 %v260_v27, %s1450_s3  ;;  %v261_v30 = vmul.f32 0.0, %v260_v27 }
 0x16f   :  { %v264_v28 = vpop.permute.xlu0 %263 }
 0x170   :  { %v266_v29 = vmul.f32 %v264_v28, %v260_v27 }
 0x172   :  { %268 = vrot.lane.b32.xlu0 %v266_v29, %s1450_s3  ;;  %v148_v29 = vadd.f32 %v1187_v61, %v1542_v13 }
 0x1e4   :  { %v269_v31 = vpop.permute.xlu0 %268 }
 0x1e5   :  { %v271_v32 = vadd.f32 %v269_v31, %v261_v30 }
 0x1e7   :  { %1365 = vtanh.f32 %v271_v32 }
 0x1f1   :  { %v1366_v33 = vpop.eup %1365 }
 0x1f2   :  { %274 = vrot.lane.b32.xlu1 %v1366_v33, %s1450_s3 }
 0x264   :  { %v275_v34 = vpop.permute.xlu1 %274 }
 0x265   :  { %v277_v35 = vmul.f32 %v275_v34, %v260_v27 }
 0x267   :  { %279 = vrot.lane.b32.xlu1 %v277_v35, %s1451_s13 }
 0x2d9   :  { %v280_v36 = vpop.permute.xlu1 %279 }
 0x2da   :  { %1214 = vmatmul.mubr.msk.f32.vlgmr.msra.gmra.mrb[2].mxu1 %vm178_vm3, %v280_v36 }
 0x2db   :  { %1317 = vmatpush3.bf16.msra.mxu1 %v1506_v7  ;;  %1235 = vmatprep.mubr.msk.f32.mxu1 %vm1448_vm1, %v1449_v10 }
 0x2dc   :  { %1318 = vmatprep.subr.bf16.mxu1 %v1447_v3 }
 0x2df   :  { %1320 = vmatpush3.bf16.msra.mxu1 %v1521_v12 }
 0x2e0   :  { %1327 = vmatprep.subr.bf16.mxu1 %v1447_v3 }
 0x3ad   :  { %v349_v38 = vpop.f32.mrb[2].mxu1 }
 0x3ae   :  { %v353_v39 = vadd.f32 %v349_v38, %v138_v37  ;;  %v1215_v40 = vpop.f32.mrb[3].mxu1 }
 0x3b0   :  { %v1108_v41 = vmul.f32 -1.442695, %v353_v39 }
 0x3b2   :  { %1367 = vpow2.f32 %v1108_v41 }
 0x3b3   :  { %1369 = vtanh.f32 %v353_v39 }
 0x3bc   :  { %v1368_v42 = vpop.eup %1367 }
 0x3bd   :  { %v357_v43 = vadd.f32 1.0, %v1368_v42  ;;  %v1370_v44 = vpop.eup %1369 }
 0x3bf   :  { %1371 = vrcp.f32 %v357_v43 }
 0x3c9   :  { %v1372_v45 = vpop.eup %1371 }
 0x3ca   :  { %v361_v46 = vsel %vm177_vm2, %v1372_v45, %v1370_v44 }
 0x3cb   :  { %364 = vrot.lane.b32.xlu0 %v361_v46, %s1450_s3  ;;  %v362_v49 = vmul.f32 %v361_v46, %v271_v32 }
 0x43d   :  { %v365_v47 = vpop.permute.xlu0 %364 }
 0x43e   :  { %v367_v48 = vmul.f32 %v365_v47, %v361_v46 }
 0x440   :  { %369 = vrot.lane.b32.xlu1 %v367_v48, %s1450_s3  ;;  %v153_v48 = vadd.f32 %v1542_v13, %v1596_v0 }
 0x4b2   :  { %v370_v50 = vpop.permute.xlu1 %369 }
 0x4b3   :  { %v372_v51 = vadd.f32 %v370_v50, %v362_v49 }
 0x4b5   :  { %1373 = vtanh.f32 %v372_v51 }
 0x4bf   :  { %v1374_v58 = vpop.eup %1373 }
 0x4c0   :  { %375 = vrot.lane.b32.xlu0 %v1374_v58, %s1450_s3 }
 0x532   :  { %v376_v59 = vpop.permute.xlu0 %375 }
 0x533   :  { %v378_v60 = vmul.f32 %v376_v59, %v361_v46 }
 0x535   :  { %380 = vrot.lane.b32.xlu1 %v378_v60, %s1451_s13 }
 0x5a7   :  { %v381_v4 = vpop.permute.xlu1 %380 }
 0x5a8   :  { %1225 = vmatmul.mubr.msk.f32.vlgmr.msra.gmra.mrb[8].mxu0 %vm178_vm3, %v381_v4 }
 0x5a9   :  { %1323 = vmatpush3.bf16.msra.mxu0 %v1506_v7  ;;  %1246 = vmatprep.mubr.msk.f32.mxu0 %vm1448_vm1, %v1449_v10 }
 0x5aa   :  { %1324 = vmatprep.subr.bf16.mxu0 %v1447_v3 }
 0x5ad   :  { %1326 = vmatpush3.bf16.msra.mxu0 %v1521_v12 }
 0x5ae   :  { %1333 = vmatprep.subr.bf16.mxu0 %v1447_v3 }
 0x67b   :  { %v450_v6 = vpop.f32.mrb[8].mxu0 }
 0x67c   :  { %v454_v8 = vadd.f32 %v450_v6, %v143_v5  ;;  %v1226_v9 = vpop.f32.mrb[9].mxu0 }
 0x67e   :  { %v1110_v11 = vmul.f32 -1.442695, %v454_v8 }
 0x680   :  { %1375 = vpow2.f32 %v1110_v11 }
 0x681   :  { %1377 = vtanh.f32 %v454_v8  ;;  %v158_v8 = vadd.f32 %v1594_v63, %v1542_v13 }
 0x68a   :  { %v1376_v14 = vpop.eup %1375 }
 0x68b   :  { %v458_v15 = vadd.f32 1.0, %v1376_v14  ;;  %v1378_v16 = vpop.eup %1377 }
 0x68d   :  { %1379 = vrcp.f32 %v458_v15 }
 0x697   :  { %v1380_v17 = vpop.eup %1379 }
 0x698   :  { %v462_v18 = vsel %vm177_vm2, %v1380_v17, %v1378_v16 }
 0x699   :  { %465 = vrot.lane.b32.xlu0 %v462_v18, %s1450_s3  ;;  %v463_v21 = vmul.f32 %v462_v18, %v372_v51 }
 0x70b   :  { %v466_v19 = vpop.permute.xlu0 %465 }
 0x70c   :  { %v468_v20 = vmul.f32 %v466_v19, %v462_v18 }
 0x70e   :  { %470 = vrot.lane.b32.xlu1 %v468_v20, %s1450_s3 }
 0x780   :  { %v471_v22 = vpop.permute.xlu1 %470 }
 0x781   :  { %v473_v23 = vadd.f32 %v471_v22, %v463_v21 }
 0x783   :  { %1381 = vtanh.f32 %v473_v23 }
 0x78d   :  { %v1382_v25 = vpop.eup %1381 }
 0x78e   :  { %476 = vrot.lane.b32.xlu0 %v1382_v25, %s1450_s3 }
 0x800   :  { %v477_v26 = vpop.permute.xlu0 %476 }
 0x801   :  { %v479_v27 = vmul.f32 %v477_v26, %v462_v18 }
 0x803   :  { %481 = vrot.lane.b32.xlu1 %v479_v27, %s1451_s13 }
 0x875   :  { %v482_v28 = vpop.permute.xlu1 %481 }
 0x876   :  { %1236 = vmatmul.mubr.msk.f32.vlgmr.msra.gmra.mrb[4].mxu1 %vm178_vm3, %v482_v28  ;;  %v163_v28 = vadd.f32 %v1542_v13, %v1600_v2 }
 0x877   :  { %1329 = vmatpush3.bf16.msra.mxu1 %v1506_v7  ;;  %1257 = vmatprep.mubr.msk.f32.mxu1 %vm1448_vm1, %v1449_v10 }
 0x878   :  { %1330 = vmatprep.subr.bf16.mxu1 %v1447_v3 }
 0x87b   :  { %1332 = vmatpush3.bf16.msra.mxu1 %v1521_v12 }
 0x87c   :  { %1339 = vmatprep.subr.bf16.mxu1 %v1447_v3 }
 0x949   :  { %v551_v30 = vpop.f32.mrb[4].mxu1 }
 0x94a   :  { %v555_v31 = vadd.f32 %v551_v30, %v148_v29  ;;  %v1237_v32 = vpop.f32.mrb[5].mxu1 }
 0x94c   :  { %v1112_v33 = vmul.f32 -1.442695, %v555_v31 }
 0x94e   :  { %1383 = vpow2.f32 %v1112_v33 }
 0x94f   :  { %1385 = vtanh.f32 %v555_v31 }
 0x958   :  { %v1384_v34 = vpop.eup %1383 }
 0x959   :  { %v559_v35 = vadd.f32 1.0, %v1384_v34  ;;  %v1386_v36 = vpop.eup %1385 }
 0x95b   :  { %1387 = vrcp.f32 %v559_v35 }
 0x965   :  { %v1388_v37 = vpop.eup %1387 }
 0x966   :  { %v563_v38 = vsel %vm177_vm2, %v1388_v37, %v1386_v36 }
 0x967   :  { %566 = vrot.lane.b32.xlu0 %v563_v38, %s1450_s3  ;;  %v564_v41 = vmul.f32 %v563_v38, %v473_v23 }
 0x9d9   :  { %v567_v39 = vpop.permute.xlu0 %566 }
 0x9da   :  { %v569_v40 = vmul.f32 %v567_v39, %v563_v38 }
 0x9dc   :  { %571 = vrot.lane.b32.xlu1 %v569_v40, %s1450_s3 }
 0xa4e   :  { %v572_v42 = vpop.permute.xlu1 %571 }
 0xa4f   :  { %v574_v43 = vadd.f32 %v572_v42, %v564_v41 }
 0xa51   :  { %1389 = vtanh.f32 %v574_v43 }
 0xa5b   :  { %v1390_v44 = vpop.eup %1389 }
 0xa5c   :  { %577 = vrot.lane.b32.xlu0 %v1390_v44, %s1450_s3 }
 0xace   :  { %v578_v45 = vpop.permute.xlu0 %577 }
 0xacf   :  { %v580_v46 = vmul.f32 %v578_v45, %v563_v38  ;;  %v168_v45 = vadd.f32 %v1598_v1, %v1542_v13 }
 0xad1   :  { %582 = vrot.lane.b32.xlu1 %v580_v46, %s1451_s13 }
 0xb43   :  { %v583_v47 = vpop.permute.xlu1 %582 }
 0xb44   :  { %1247 = vmatmul.mubr.msk.f32.vlgmr.msra.gmra.mrb[10].mxu0 %vm178_vm3, %v583_v47 }
 0xb45   :  { %1335 = vmatpush3.bf16.msra.mxu0 %v1506_v7  ;;  %1268 = vmatprep.mubr.msk.f32.mxu0 %vm1448_vm1, %v1449_v10 }
 0xb46   :  { %1336 = vmatprep.subr.bf16.mxu0 %v1447_v3 }
 0xb49   :  { %1338 = vmatpush3.bf16.msra.mxu0 %v1521_v12 }
 0xb4a   :  { %1345 = vmatprep.subr.bf16.mxu0 %v1447_v3 }
 0xc17   :  { %v652_v49 = vpop.f32.mrb[10].mxu0 }
 0xc18   :  { %v656_v50 = vadd.f32 %v652_v49, %v153_v48  ;;  %v1248_v51 = vpop.f32.mrb[11].mxu0 }
 0xc1a   :  { %v1114_v52 = vmul.f32 -1.442695, %v656_v50 }
 0xc1c   :  { %1391 = vpow2.f32 %v1114_v52 }
 0xc1d   :  { %1393 = vtanh.f32 %v656_v50 }
 0xc26   :  { %v1392_v53 = vpop.eup %1391 }
 0xc27   :  { %v660_v54 = vadd.f32 1.0, %v1392_v53  ;;  %v1394_v55 = vpop.eup %1393 }
 0xc29   :  { %1395 = vrcp.f32 %v660_v54 }
 0xc33   :  { %v1396_v56 = vpop.eup %1395 }
 0xc34   :  { %v664_v57 = vsel %vm177_vm2, %v1396_v56, %v1394_v55 }
 0xc35   :  { %667 = vrot.lane.b32.xlu0 %v664_v57, %s1450_s3  ;;  %v665_v60 = vmul.f32 %v664_v57, %v574_v43 }
 0xca7   :  { %v668_v58 = vpop.permute.xlu0 %667 }
 0xca8   :  { %v670_v59 = vmul.f32 %v668_v58, %v664_v57  ;;  %v985_v58 = vld [vmem:[%s1713_s4] sm:$0xff] }
 0xcaa   :  { %672 = vrot.lane.b32.xlu1 %v670_v59, %s1450_s3  ;;  %v986_v59 = vld [vmem:[%s1713_s4 + $0x8] sm:$0xff] }
 0xd1c   :  { %v673_v61 = vpop.permute.xlu1 %672 }
 0xd1d   :  { %v675_v62 = vadd.f32 %v673_v61, %v665_v60  ;;  %v1346_v60 = vpack.c.bf16 %v986_v59, %v985_v58  ;;  %v988_v61 = vld [vmem:[%s1713_s4 + $0x18] sm:$0xff] }
 0xd1f   :  { %1397 = vtanh.f32 %v675_v62 }
 0xd29   :  { %v1398_v0 = vpop.eup %1397 }
 0xd2a   :  { %678 = vrot.lane.b32.xlu0 %v1398_v0, %s1450_s3 }
 0xd9c   :  { %v679_v4 = vpop.permute.xlu0 %678 }
 0xd9d   :  { %v681_v5 = vmul.f32 %v679_v4, %v664_v57 }
 0xd9f   :  { %683 = vrot.lane.b32.xlu1 %v681_v5, %s1451_s13 }
 0xe11   :  { %v684_v6 = vpop.permute.xlu1 %683 }
 0xe12   :  { %1258 = vmatmul.mubr.msk.f32.vlgmr.msra.gmra.mrb[6].mxu1 %vm178_vm3, %v684_v6 }
 0xe13   :  { %1341 = vmatpush3.bf16.msra.mxu1 %v1506_v7  ;;  %1279 = vmatprep.mubr.msk.f32.mxu1 %vm1448_vm1, %v1449_v10 }
 0xe14   :  { %1342 = vmatprep.subr.bf16.mxu1 %v1447_v3 }
 0xe17   :  { %1344 = vmatpush3.bf16.msra.mxu1 %v1521_v12 }
 0xee5   :  { %v753_v9 = vpop.f32.mrb[6].mxu1 }
 0xee6   :  { %v757_v11 = vadd.f32 %v753_v9, %v158_v8  ;;  %v1259_v14 = vpop.f32.mrb[7].mxu1  ;;  %v1121_v8 = vld [vmem:[%s1714_s5] ss:$0 sm:$0xff] }
 0xee8   :  { %v1116_v15 = vmul.f32 -1.442695, %v757_v11 }
 0xeea   :  { %1399 = vpow2.f32 %v1116_v15 }
 0xeeb   :  { %1401 = vtanh.f32 %v757_v11 }
 0xef4   :  { %v1400_v16 = vpop.eup %1399 }
 0xef5   :  { %v761_v17 = vadd.f32 1.0, %v1400_v16  ;;  %v1402_v7 = vpop.eup %1401 }
 0xef7   :  { %1403 = vrcp.f32 %v761_v17 }
 0xf01   :  { %v1404_v18 = vpop.eup %1403 }
 0xf02   :  { %v765_v19 = vsel %vm177_vm2, %v1404_v18, %v1402_v7 }
 0xf03   :  { %768 = vrot.lane.b32.xlu0 %v765_v19, %s1450_s3  ;;  %v766_v63 = vmul.f32 %v765_v19, %v675_v62  ;;  %v1349_v62 = vpack.c.bf16 %v988_v61, %v987_v24 }
 0xf75   :  { %v769_v12 = vpop.permute.xlu0 %768 }
 0xf76   :  { %v771_v20 = vmul.f32 %v769_v12, %v765_v19 }
 0xf78   :  { %773 = vrot.lane.b32.xlu1 %v771_v20, %s1450_s3 }
 0xfea   :  { %v774_v21 = vpop.permute.xlu1 %773 }
 0xfeb   :  { %v776_v22 = vadd.f32 %v774_v21, %v766_v63 }
 0xfed   :  { %1405 = vtanh.f32 %v776_v22 }
 0xff7   :  { %v1406_v23 = vpop.eup %1405 }
 0xff8   :  { %779 = vrot.lane.b32.xlu0 %v1406_v23, %s1450_s3 }
0x106a   :  { %v780_v25 = vpop.permute.xlu0 %779 }
0x106b   :  { %v782_v26 = vmul.f32 %v780_v25, %v765_v19 }
0x106d   :  { %784 = vrot.lane.b32.xlu1 %v782_v26, %s1451_s13 }
0x10df   :  { %v785_v27 = vpop.permute.xlu1 %784 }
0x10e0   :  { %1269 = vmatmul.mubr.msk.f32.vlgmr.msra.gmra.mrb[12].mxu0 %vm178_vm3, %v785_v27 }
0x10e1   :  { %1290 = vmatprep.mubr.msk.f32.mxu0 %vm1448_vm1, %v1449_v10  ;;  %1347 = vmatpush3.bf16.msra.mxu0 %v1346_v60 }
0x10e2   :  { %1348 = vmatprep.subr.bf16.mxu0 %v1447_v3 }
0x10e5   :  { %1350 = vmatpush3.bf16.msra.mxu0 %v1349_v62 }
0x11b3   :  { %v854_v29 = vpop.f32.mrb[12].mxu0 }
0x11b4   :  { %v858_v30 = vadd.f32 %v854_v29, %v163_v28  ;;  %v1270_v31 = vpop.f32.mrb[13].mxu0 }
0x11b6   :  { %v1118_v32 = vmul.f32 -1.442695, %v858_v30 }
0x11b8   :  { %1407 = vpow2.f32 %v1118_v32 }
0x11b9   :  { %1409 = vtanh.f32 %v858_v30 }
0x11c2   :  { %v1408_v33 = vpop.eup %1407 }
0x11c3   :  { %v862_v34 = vadd.f32 1.0, %v1408_v33  ;;  %v1410_v35 = vpop.eup %1409 }
0x11c5   :  { %1411 = vrcp.f32 %v862_v34 }
0x11cf   :  { %v1412_v36 = vpop.eup %1411 }
0x11d0   :  { %v866_v37 = vsel %vm177_vm2, %v1412_v36, %v1410_v35 }
0x11d1   :  { %869 = vrot.lane.b32.xlu0 %v866_v37, %s1450_s3  ;;  %v867_v2 = vmul.f32 %v866_v37, %v776_v22 }
0x1243   :  { %v870_v10 = vpop.permute.xlu0 %869 }
0x1244   :  { %v872_v38 = vmul.f32 %v870_v10, %v866_v37 }
0x1246   :  { %874 = vrot.lane.b32.xlu1 %v872_v38, %s1450_s3 }
0x12b8   :  { %v875_v39 = vpop.permute.xlu1 %874 }
0x12b9   :  { %v877_v40 = vadd.f32 %v875_v39, %v867_v2 }
0x12bb   :  { %1413 = vtanh.f32 %v877_v40 }
0x12c5   :  { %v1414_v41 = vpop.eup %1413 }
0x12c6   :  { %880 = vrot.lane.b32.xlu0 %v1414_v41, %s1450_s3 }
0x1338   :  { %v881_v42 = vpop.permute.xlu0 %880 }
0x1339   :  { %v883_v43 = vmul.f32 %v881_v42, %v866_v37 }
0x133b   :  { %885 = vrot.lane.b32.xlu1 %v883_v43, %s1451_s13 }
0x13ad   :  { %v886_v44 = vpop.permute.xlu1 %885 }
0x13ae   :  { %1280 = vmatmul.mubr.msk.f32.vlgmr.msra.gmra.mrb[8].mxu1 %vm178_vm3, %v886_v44 }
0x1481   :  { %v955_v46 = vpop.f32.mrb[8].mxu1 }
0x1482   :  { %v959_v47 = vadd.f32 %v955_v46, %v168_v45  ;;  %v1281_v48 = vpop.f32.mrb[9].mxu1 }
0x1484   :  { %v1120_v49 = vmul.f32 -1.442695, %v959_v47 }
0x1486   :  { %1415 = vpow2.f32 %v1120_v49 }
0x1487   :  { %1417 = vtanh.f32 %v959_v47 }
0x1490   :  { %v1416_v50 = vpop.eup %1415 }
0x1491   :  { %v963_v51 = vadd.f32 1.0, %v1416_v50  ;;  %v1418_v52 = vpop.eup %1417 }
0x1493   :  { %1419 = vrcp.f32 %v963_v51 }
0x149d   :  { %v1420_v53 = vpop.eup %1419 }
0x149e   :  { %v967_v54 = vsel %vm177_vm2, %v1420_v53, %v1418_v52 }
0x149f   :  { %970 = vrot.lane.b32.xlu0 %v967_v54, %s1450_s3  ;;  %v968_v13 = vmul.f32 %v967_v54, %v877_v40 }
0x1511   :  { %v971_v55 = vpop.permute.xlu0 %970 }
0x1512   :  { %v973_v56 = vmul.f32 %v971_v55, %v967_v54 }
0x1514   :  { %975 = vrot.lane.b32.xlu1 %v973_v56, %s1450_s3 }
0x1586   :  { %v976_v1 = vpop.permute.xlu1 %975 }
0x1587   :  { %v978_v57 = vadd.f32 %v976_v1, %v968_v13 }
0x1589   :  { %1421 = vtanh.f32 %v978_v57 }
0x1593   :  { %v1422_v0 = vpop.eup %1421 }
0x1594   :  { %981 = vrot.lane.b32.xlu0 %v1422_v0, %s1450_s3 }
0x1606   :  { %v982_v4 = vpop.permute.xlu0 %981 }
0x1607   :  { %v984_v5 = vmul.f32 %v982_v4, %v967_v54 }
0x1609   :  { %1071 = vrot.lane.b32.xlu0 %v984_v5, %s1452_s8  ;;  %997 = vrot.lane.b32.xlu1 %v984_v5, %s1451_s13 }
0x160d   :  { %1075 = vrot.lane.b32.xlu1 %v978_v57, %s1453_s9 }
0x167b   :  { %v998_v6 = vpop.permute.xlu1 %997  ;;  %v1072_v14 = vpop.permute.xlu0 %1071 }
0x167c   :  { %1291 = vmatmul.mubr.msk.f32.vlgmr.msra.gmra.mrb[14].mxu0 %vm178_vm3, %v998_v6 }
0x167f   :  { %v1076_v15 = vpop.permute.xlu1 %1075 }
0x174f   :  { %v1067_v3 = vpop.f32.mrb[14].mxu0 }
0x1750   :  { %v1068_v9 = vadd.f32 %v1121_v8, %v1067_v3  ;;  %v1292_v11 = vpop.f32.mrb[15].mxu0 }
0x1752   :  { %v1078_v16 = vsel %vm41_vm0, %v1068_v9, %v1072_v14 }
0x1753   :  { %v1080_v17 = vsel %vm1079_vm4, %v1078_v16, %v1076_v15 }
0x1754   :  { %1082 = vst.msk [vmem:[#allocation2] sm:$0xff] %vm1081_vm5, %v1080_v17 }
0x1755   :  { %1434 = shalt.err (!%p1431_p4)
}
0x1756   :  { %s1435_s13 = scalar_lea.hbm %s1715_s6, 128 }
0x1757   :  { %p1436_p5 = scmp.ne.s32.totalorder %s1715_s6, %s1435_s13  ;;  %p1439_p6 = scmp.lt.u32.totalorder %s1435_s13, %s1715_s6 }
0x1759   :  { %p1441_p7 = pnand %p1439_p6, %p1436_p5 }
0x175b   :  { %1444 = shalt.err (!%p1441_p7)
}
0x175c   :  { %1092 = dma.vmem_to_hbm [thread:$0]  %s1090_s2, 128, %s1715_s6, [#allocation3]  }
0x175d   :  { %1445 = dma.done.wait [#allocation3], 128  }
0x175e   :  { %1446 = vsyncadd [#allocation3], 4294967168 }
0x175f   :  { %1096 = vsyncpa [#allocation3], 1 }

</bundles_post_ra>
